<compile_context>
chip_gen: v7x
topology: tpu7x:2x2x1
jax: 0.10.0
libtpu: 0.0.40
codegen_flags: <defaults>
</compile_context>

<pallas_src>
from functools import partial

import jax
import jax.numpy as jnp
from jax.experimental import pallas as pl
from jax.experimental.pallas import tpu as pltpu

F32 = jnp.float32
BF16 = jnp.bfloat16


# ----------------------------------------------------------------------------
# Fused per-example kernel: CNNEncoder -> SyntaxHead -> decode -> SyntaxRel
# (grid = (B,), batch dim squeezed out of every block)
# ----------------------------------------------------------------------------
def _syntax_kernel(*refs, n_layers, H, R):
    """ref order:
       x (S,E) f32, mask_q (S,1) f32, key_mask (1,T) f32,
       per encoder layer: w (K,Cin,Cout) bf16, b (1,Cout), scale (1,Cout), shift (1,Cout),
       w4 (D,4H) bf16, b4 (1,4H) f32,
       root_tail_h (1,H) f32, root_head_r (1,H) f32,
       h_kernel (H,H) bf16, r_kernel (H,R*H) bf16,
       outputs: head_scores (S,T) f32, rel_scores (S,R) f32
    """
    it = iter(refs)
    x_ref = next(it)
    mq_ref = next(it)
    km_ref = next(it)
    enc = [(next(it), next(it), next(it), next(it)) for _ in range(n_layers)]
    w4_ref, b4_ref = next(it), next(it)
    rth_ref, rhr_ref = next(it), next(it)
    hker_ref, rker_ref = next(it), next(it)
    head_out, rel_out = next(it), next(it)

    S = x_ref.shape[0]
    T = km_ref.shape[-1]

    x = x_ref[...]                                     # (S, E) f32
    mq = mq_ref[...]                                   # (S, 1) f32, 1.0 = real token

    # ---- CNNEncoder: per layer  masked_fill(pad,0) -> Conv1d(k,pad) -> ReLU -> BN ----
    # Conv1d is K per-tap (Cin,Cout) matmuls on shifted inputs; the zero rows inserted
    # by the shift reproduce the conv zero padding exactly (no halo / window buffers).
    for w_ref, b_ref, sc_ref, sh_ref in enc:
        K = w_ref.shape[0]
        pad = (K - 1) // 2
        xm = x * mq                                    # zero PAD positions (pre-layer)
        cin = xm.shape[-1]
        acc = None
        for k in range(K):
            o = k - pad                                # tap offset: xk[s] = xm[s + o]
            if o < 0:
                zeros = jnp.zeros((-o, cin), xm.dtype)
                xk = jnp.concatenate([zeros, xm[:S + o]], axis=0)
            elif o > 0:
                zeros = jnp.zeros((o, cin), xm.dtype)
                xk = jnp.concatenate([xm[o:], zeros], axis=0)
            else:
                xk = xm
            term = jnp.dot(xk.astype(BF16), w_ref[k],  # (S,Cin) x (Cin,Cout) on MXU
                           preferred_element_type=F32)
            acc = term if acc is None else acc + term
        acc = jnp.maximum(acc + b_ref[...], 0.0)       # conv bias + ReLU
        x = acc * sc_ref[...] + sh_ref[...]            # folded BatchNorm1d (eval)

    # ---- Fused FF projections: one lane-dense (S,D) x (D,4H) matmul over token rows.
    # Columns: [0:H)=head-branch head FF, [H:2H)=head-branch tail FF,
    #          [2H:3H)=rel-branch head FF, [3H:4H)=rel-branch tail FF.
    ht4 = jnp.dot(x.astype(BF16), w4_ref[...], preferred_element_type=F32) + b4_ref[...]
    ht4 = jnp.maximum(ht4, 0.0)                        # (S, 4H) f32
    head_h = ht4[:, 0 * H:1 * H]                       # query side (tokens only)
    tail_h_tok = ht4[:, 1 * H:2 * H]                   # key side (needs root row)
    head_r_tok = ht4[:, 2 * H:3 * H]                   # gather source (needs root row)
    tail_r = ht4[:, 3 * H:4 * H]                       # query side (tokens only)

    # key-side tensors get their (input-independent, wrapper-precomputed) root row
    tail_h = jnp.concatenate([rth_ref[...], tail_h_tok], axis=0)   # (T, H)
    head_r = jnp.concatenate([rhr_ref[...], head_r_tok], axis=0)   # (T, H)

    # ---- SyntaxHead: scores = relu(xWh) @ K @ relu(xWt)^T, query rows = tokens only ----
    hk = jnp.dot(head_h.astype(BF16), hker_ref[...], preferred_element_type=F32)
    scores = jax.lax.dot_general(hk.astype(BF16), tail_h.astype(BF16),
                                 (((1,), (1,)), ((), ())),
                                 preferred_element_type=F32)       # (S, T), no strip
    head_out[...] = scores

    # ---- SyntaxHead.decode: mask invalid pairs, first-index argmax over heads (f32) ----
    pair = (mq * km_ref[...]) > 0.0                                # (S, T)
    masked = jnp.where(pair, scores, jnp.finfo(F32).min)
    maxv = jnp.max(masked, axis=-1, keepdims=True)
    col = jax.lax.broadcasted_iota(jnp.int32, (S, T), 1).astype(F32)
    head_id = jnp.min(jnp.where(masked >= maxv, col, float(T)),
                      axis=-1, keepdims=True)                      # (S, 1) f32

    # ---- SyntaxRel: exact f32 one-hot gather of head reps + bilinear scores ----
    onehot = (col == head_id).astype(F32)                          # (S, T)
    gathered = jnp.dot(onehot, head_r, preferred_element_type=F32) # (S, H), exact rows
    relf = jnp.dot(gathered.astype(BF16), rker_ref[...],
                   preferred_element_type=F32)                     # (S, R*H) lane-dense
    # consume relf per rel-class slice (no tail replication, no seg matmul)
    cols = []
    for r in range(R):
        cols.append(jnp.sum(relf[:, r * H:(r + 1) * H] * tail_r,
                            axis=-1, keepdims=True))               # (S, 1)
    rel_out[...] = jnp.concatenate(cols, axis=-1)                  # (S, R)


# ----------------------------------------------------------------------------
# Parameters (deterministic synthetic init; shapes follow the torch modules)
# ----------------------------------------------------------------------------
def init_params(key, *, word_vocab=100, shape_vocab=10, word_dim=16, shape_dim=16,
                layer_dims=(32, 32), kernel_size=3, syntax_hidden=32, rel_dim=8):
    ks = iter(jax.random.split(key, 32))
    emb_dim = word_dim + shape_dim
    p = {
        'word_emb': jax.random.normal(next(ks), (word_vocab, word_dim), F32) * 0.1,
        'shape_emb': jax.random.normal(next(ks), (shape_vocab, shape_dim), F32) * 0.1,
        'encoder': [],
    }
    dims = (emb_dim,) + tuple(layer_dims)
    for i in range(1, len(dims)):
        cin, cout = dims[i - 1], dims[i]
        p['encoder'].append({
            # torch Conv1d weight (Cout, Cin, K) stored per-tap: (K, Cin, Cout)
            'w': jax.random.normal(next(ks), (kernel_size, cin, cout), F32) * 0.1,
            'b': jax.random.normal(next(ks), (1, cout), F32) * 0.05,
            # folded BatchNorm1d (eval): scale = gamma/sqrt(var+eps), shift = beta - mean*scale
            'scale': 1.0 + 0.1 * jax.random.normal(next(ks), (1, cout), F32),
            'shift': 0.05 * jax.random.normal(next(ks), (1, cout), F32),
        })
    d = dims[-1]
    h = syntax_hidden
    p['head'] = {
        'root': jax.random.uniform(next(ks), (1, d), F32),
        # joint head|tail projection: columns [0:H) = head FF, [H:2H) = tail FF
        'wht': jax.random.normal(next(ks), (d, 2 * h), F32) * 0.1,
        'bht': jnp.zeros((1, 2 * h), F32),
        'kernel': jnp.eye(h, dtype=F32),                 # nn.init.eye_
    }
    p['rel'] = {
        'root': jax.random.uniform(next(ks), (1, d), F32),
        'wht': jax.random.normal(next(ks), (d, 2 * h), F32) * 0.1,
        'bht': jnp.zeros((1, 2 * h), F32),
        # torch SyntaxRel.kernel (H, H*rel_dim), columns rel-major / hidden-minor
        'kernel': jax.random.normal(next(ks), (h, rel_dim * h), F32) * 0.1,
    }
    return p


def _resident(a):
    """Full-array block, same block index every grid step -> stays resident in VMEM."""
    zeros = (0,) * a.ndim
    return pl.BlockSpec(a.shape, lambda b, _z=zeros: _z)


# ----------------------------------------------------------------------------
# Full forward pass (Syntax.forward with target_head_id=None)
# ----------------------------------------------------------------------------
def syntax_forward(params, word_id, shape_id, pad_mask):
    # --- WordShapeEmbedding (glue: table lookups + concat stay in XLA) ---
    word = params['word_emb'][word_id]
    shape = params['shape_emb'][shape_id]
    x = jnp.concatenate([word, shape], axis=-1).astype(F32)       # (B, S, E)
    mask_f = (~pad_mask).astype(F32)                              # (B, S), 1.0 = token

    B, S, E = x.shape
    T = S + 1
    hp, rp = params['head'], params['rel']
    D = hp['root'].shape[-1]
    H = hp['wht'].shape[1] // 2
    R = rp['kernel'].shape[1] // H
    n_layers = len(params['encoder'])
    K = params['encoder'][0]['w'].shape[0]

    mask_q = mask_f[:, :, None]                                   # (B, S, 1) query mask
    key_mask = jnp.concatenate([jnp.ones((B, 1), F32), mask_f],
                               axis=1)[:, None, :]                # (B, 1, T) keys incl. root

    # fused FF weight (head-branch cols [0:2H), rel-branch cols [2H:4H)), bf16 for MXU
    w4 = jnp.concatenate([hp['wht'], rp['wht']], axis=1).astype(BF16)   # (D, 4H)
    b4 = jnp.concatenate([hp['bht'], rp['bht']], axis=1)                # (1, 4H) f32
    # key-side ROOT rows are input-independent in eval mode -> computed once here
    root_tail_h = jnp.maximum(hp['root'] @ hp['wht'][:, H:] + hp['bht'][:, H:], 0.0)
    root_head_r = jnp.maximum(rp['root'] @ rp['wht'][:, :H] + rp['bht'][:, :H], 0.0)

    static_args = []
    for layer in params['encoder']:
        static_args += [layer['w'].astype(BF16), layer['b'],
                        layer['scale'], layer['shift']]
    static_args += [w4, b4, root_tail_h, root_head_r,
                    hp['kernel'].astype(BF16), rp['kernel'].astype(BF16)]

    args = [x, mask_q, key_mask] + static_args
    in_specs = [
        pl.BlockSpec((None, S, E), lambda b: (b, 0, 0)),
        pl.BlockSpec((None, S, 1), lambda b: (b, 0, 0)),
        pl.BlockSpec((None, 1, T), lambda b: (b, 0, 0)),
    ] + [_resident(a) for a in static_args]

    # --- VMEM budget: resident weights + double-buffered streams + in-kernel temps ---
    cdims = [E] + [layer['w'].shape[2] for layer in params['encoder']]
    cmax = max(cdims + [D])
    weight_bytes = sum(int(a.size) * a.dtype.itemsize for a in static_args)
    stream_bytes = 4 * (S * E + S + T + S * T + S * R)            # per-step in/out blocks
    temp_bytes = 4 * (4 * S * cmax + S * 4 * H + 6 * S * T + 2 * S * R * H + 4 * T * H)
    est = weight_bytes + 2 * stream_bytes + temp_bytes
    vmem_limit = int(min(max(2 * est, 32 << 20), 64 << 20))       # cap at v7x physical

    # --- rough cost hint so XLA schedules the surrounding gathers around the call ---
    flops = 0
    for i in range(1, len(cdims)):
        flops += 2 * S * K * cdims[i - 1] * cdims[i]              # conv taps
    flops += 2 * S * D * 4 * H                                    # fused FF projections
    flops += 2 * S * H * H + 2 * S * H * T                        # biaffine head scores
    flops += 2 * S * T * H                                        # one-hot gather matmul
    flops += 2 * S * H * R * H + 2 * S * R * H                    # rel kernel + reduce
    flops *= B
    bytes_accessed = (sum(int(a.size) * a.dtype.itemsize for a in args)
                      + 4 * (B * S * T + B * S * R))

    head_scores, rel_scores = pl.pallas_call(
        partial(_syntax_kernel, n_layers=n_layers, H=H, R=R),
        grid=(B,),
        in_specs=in_specs,
        out_specs=(pl.BlockSpec((None, S, T), lambda b: (b, 0, 0)),
                   pl.BlockSpec((None, S, R), lambda b: (b, 0, 0))),
        out_shape=(jax.ShapeDtypeStruct((B, S, T), F32),
                   jax.ShapeDtypeStruct((B, S, R), F32)),
        compiler_params=pltpu.CompilerParams(
            dimension_semantics=("parallel",),        # batch steps -> both TCs on v7x
            vmem_limit_bytes=vmem_limit),
        cost_estimate=pl.CostEstimate(flops=int(flops), transcendentals=0,
                                      bytes_accessed=int(bytes_accessed)),
    )(*args)

    # NOTE: for very long sequences (S >~ 2k) additionally tile the biaffine/decode/rel
    # stage over the key axis T (running max / first-index carry); unnecessary here.
    # SyntaxPred(head_id=..., rel_id=...)
    return head_scores, rel_scores


if __name__ == "__main__":
    key = jax.random.PRNGKey(0)
    pkey, wkey, skey = jax.random.split(key, 3)

    B, S = 2, 8
    params = init_params(pkey)

    word_id = jax.random.randint(wkey, (B, S), 0, 100, dtype=jnp.int32)
    shape_id = jax.random.randint(skey, (B, S), 0, 10, dtype=jnp.int32)
    pad_mask = jnp.array(
        [[False] * S,
         [False] * (S - 3) + [True] * 3], dtype=bool)             # True = PAD

    fwd = jax.jit(syntax_forward)
    head_id, rel_id = fwd(params, word_id, shape_id, pad_mask)
    head_id = jax.block_until_ready(head_id)
    rel_id = jax.block_until_ready(rel_id)

    assert head_id.shape == (B, S, S + 1), head_id.shape
    assert rel_id.shape == (B, S, 8), rel_id.shape
    assert bool(jnp.all(jnp.isfinite(head_id))) and bool(jnp.all(jnp.isfinite(rel_id)))

    print("KERNEL_OK")
</pallas_src>

<mosaic_0001>
module attributes {stable_mosaic.version = 11 : i64} {
  func.func @_syntax_kernel(%arg0: i32, %arg1: memref<1x8x32xf32, #tpu.memory_space<vmem>>, %arg2: memref<1x8x1xf32, #tpu.memory_space<vmem>>, %arg3: memref<1x1x9xf32, #tpu.memory_space<vmem>>, %arg4: memref<3x32x32xbf16, #tpu.memory_space<vmem>>, %arg5: memref<1x32xf32, #tpu.memory_space<vmem>>, %arg6: memref<1x32xf32, #tpu.memory_space<vmem>>, %arg7: memref<1x32xf32, #tpu.memory_space<vmem>>, %arg8: memref<3x32x32xbf16, #tpu.memory_space<vmem>>, %arg9: memref<1x32xf32, #tpu.memory_space<vmem>>, %arg10: memref<1x32xf32, #tpu.memory_space<vmem>>, %arg11: memref<1x32xf32, #tpu.memory_space<vmem>>, %arg12: memref<32x128xbf16, #tpu.memory_space<vmem>>, %arg13: memref<1x128xf32, #tpu.memory_space<vmem>>, %arg14: memref<1x32xf32, #tpu.memory_space<vmem>>, %arg15: memref<1x32xf32, #tpu.memory_space<vmem>>, %arg16: memref<32x32xbf16, #tpu.memory_space<vmem>>, %arg17: memref<32x256xbf16, #tpu.memory_space<vmem>>, %arg18: memref<1x8x9xf32, #tpu.memory_space<vmem>>, %arg19: memref<1x8x8xf32, #tpu.memory_space<vmem>>) attributes {dimension_semantics = [#tpu.dimension_semantics<parallel>], iteration_bounds = array<i64: 2>, scalar_prefetch = 0 : i64, scratch_operands = 0 : i64, tpu.core_type = #tpu.core_type<tc>, window_params = [{transform_indices = @transform_0, window_bounds = array<i64: 1, 8, 32>}, {transform_indices = @transform_1, window_bounds = array<i64: 1, 8, 1>}, {transform_indices = @transform_2, window_bounds = array<i64: 1, 1, 9>}, {pipeline_mode = #tpu.pipeline_mode<synchronous>, transform_indices = @transform_3, window_bounds = array<i64: 3, 32, 32>}, {pipeline_mode = #tpu.pipeline_mode<synchronous>, transform_indices = @transform_4, window_bounds = array<i64: 1, 32>}, {pipeline_mode = #tpu.pipeline_mode<synchronous>, transform_indices = @transform_5, window_bounds = array<i64: 1, 32>}, {pipeline_mode = #tpu.pipeline_mode<synchronous>, transform_indices = @transform_6, window_bounds = array<i64: 1, 32>}, {pipeline_mode = #tpu.pipeline_mode<synchronous>, transform_indices = @transform_7, window_bounds = array<i64: 3, 32, 32>}, {pipeline_mode = #tpu.pipeline_mode<synchronous>, transform_indices = @transform_8, window_bounds = array<i64: 1, 32>}, {pipeline_mode = #tpu.pipeline_mode<synchronous>, transform_indices = @transform_9, window_bounds = array<i64: 1, 32>}, {pipeline_mode = #tpu.pipeline_mode<synchronous>, transform_indices = @transform_10, window_bounds = array<i64: 1, 32>}, {pipeline_mode = #tpu.pipeline_mode<synchronous>, transform_indices = @transform_11, window_bounds = array<i64: 32, 128>}, {pipeline_mode = #tpu.pipeline_mode<synchronous>, transform_indices = @transform_12, window_bounds = array<i64: 1, 128>}, {pipeline_mode = #tpu.pipeline_mode<synchronous>, transform_indices = @transform_13, window_bounds = array<i64: 1, 32>}, {pipeline_mode = #tpu.pipeline_mode<synchronous>, transform_indices = @transform_14, window_bounds = array<i64: 1, 32>}, {pipeline_mode = #tpu.pipeline_mode<synchronous>, transform_indices = @transform_15, window_bounds = array<i64: 32, 32>}, {pipeline_mode = #tpu.pipeline_mode<synchronous>, transform_indices = @transform_16, window_bounds = array<i64: 32, 256>}, {transform_indices = @transform_17, window_bounds = array<i64: 1, 8, 9>}, {transform_indices = @transform_18, window_bounds = array<i64: 1, 8, 8>}]} {
    %c0 = arith.constant 0 : index
    %c0_0 = arith.constant 0 : index
    %c0_1 = arith.constant 0 : index
    %0 = vector.load %arg1[%c0, %c0_0, %c0_1] : memref<1x8x32xf32, #tpu.memory_space<vmem>>, vector<1x8x32xf32>
    %1 = vector.shape_cast %0 : vector<1x8x32xf32> to vector<8x32xf32>
    %c0_2 = arith.constant 0 : index
    %c0_3 = arith.constant 0 : index
    %c0_4 = arith.constant 0 : index
    %2 = vector.load %arg2[%c0_2, %c0_3, %c0_4] : memref<1x8x1xf32, #tpu.memory_space<vmem>>, vector<1x8x1xf32>
    %3 = vector.shape_cast %2 : vector<1x8x1xf32> to vector<8x1xf32>
    %4 = vector.broadcast %3 : vector<8x1xf32> to vector<8x32xf32>
    %5 = arith.mulf %1, %4 : vector<8x32xf32>
    %cst = arith.constant 0.000000e+00 : f32
    %6 = vector.broadcast %cst : f32 to vector<1x32xf32>
    %7 = vector.extract_strided_slice %5 {offsets = [0, 0], sizes = [7, 32], strides = [1, 1]} : vector<8x32xf32> to vector<7x32xf32>
    %8 = tpu.concatenate %6, %7 in 0 : vector<1x32xf32>, vector<7x32xf32> -> vector<8x32xf32>
    %9 = arith.truncf %8 : vector<8x32xf32> to vector<8x32xbf16>
    %c0_5 = arith.constant 0 : index
    %c0_6 = arith.constant 0 : index
    %c0_7 = arith.constant 0 : index
    %10 = vector.load %arg4[%c0_5, %c0_6, %c0_7] : memref<3x32x32xbf16, #tpu.memory_space<vmem>>, vector<1x32x32xbf16>
    %11 = vector.shape_cast %10 : vector<1x32x32xbf16> to vector<32x32xbf16>
    %cst_8 = arith.constant dense<0.000000e+00> : vector<8x32xf32>
    %12 = tpu.matmul %9, %11, %cst_8 {dimension_numbers = #tpu.dot_dimension_numbers<[1], [0], [0], [1], [0, 0, 1, 1], [], []>} : vector<8x32xbf16>, vector<32x32xbf16>, vector<8x32xf32> -> vector<8x32xf32>
    %13 = arith.truncf %5 : vector<8x32xf32> to vector<8x32xbf16>
    %c1 = arith.constant 1 : index
    %c0_9 = arith.constant 0 : index
    %c0_10 = arith.constant 0 : index
    %14 = vector.load %arg4[%c1, %c0_9, %c0_10] : memref<3x32x32xbf16, #tpu.memory_space<vmem>>, vector<1x32x32xbf16>
    %15 = vector.shape_cast %14 : vector<1x32x32xbf16> to vector<32x32xbf16>
    %cst_11 = arith.constant dense<0.000000e+00> : vector<8x32xf32>
    %16 = tpu.matmul %13, %15, %cst_11 {dimension_numbers = #tpu.dot_dimension_numbers<[1], [0], [0], [1], [0, 0, 1, 1], [], []>} : vector<8x32xbf16>, vector<32x32xbf16>, vector<8x32xf32> -> vector<8x32xf32>
    %17 = arith.addf %12, %16 : vector<8x32xf32>
    %cst_12 = arith.constant 0.000000e+00 : f32
    %18 = vector.broadcast %cst_12 : f32 to vector<1x32xf32>
    %19 = vector.extract_strided_slice %5 {offsets = [1, 0], sizes = [7, 32], strides = [1, 1]} : vector<8x32xf32> to vector<7x32xf32>
    %20 = tpu.concatenate %19, %18 in 0 : vector<7x32xf32>, vector<1x32xf32> -> vector<8x32xf32>
    %21 = arith.truncf %20 : vector<8x32xf32> to vector<8x32xbf16>
    %c2 = arith.constant 2 : index
    %c0_13 = arith.constant 0 : index
    %c0_14 = arith.constant 0 : index
    %22 = vector.load %arg4[%c2, %c0_13, %c0_14] : memref<3x32x32xbf16, #tpu.memory_space<vmem>>, vector<1x32x32xbf16>
    %23 = vector.shape_cast %22 : vector<1x32x32xbf16> to vector<32x32xbf16>
    %cst_15 = arith.constant dense<0.000000e+00> : vector<8x32xf32>
    %24 = tpu.matmul %21, %23, %cst_15 {dimension_numbers = #tpu.dot_dimension_numbers<[1], [0], [0], [1], [0, 0, 1, 1], [], []>} : vector<8x32xbf16>, vector<32x32xbf16>, vector<8x32xf32> -> vector<8x32xf32>
    %25 = arith.addf %17, %24 : vector<8x32xf32>
    %c0_16 = arith.constant 0 : index
    %c0_17 = arith.constant 0 : index
    %26 = vector.load %arg5[%c0_16, %c0_17] : memref<1x32xf32, #tpu.memory_space<vmem>>, vector<1x32xf32>
    %27 = vector.broadcast %26 : vector<1x32xf32> to vector<8x32xf32>
    %28 = arith.addf %25, %27 : vector<8x32xf32>
    %cst_18 = arith.constant 0.000000e+00 : f32
    %29 = vector.broadcast %cst_18 : f32 to vector<8x32xf32>
    %30 = arith.maximumf %28, %29 : vector<8x32xf32>
    %c0_19 = arith.constant 0 : index
    %c0_20 = arith.constant 0 : index
    %31 = vector.load %arg6[%c0_19, %c0_20] : memref<1x32xf32, #tpu.memory_space<vmem>>, vector<1x32xf32>
    %32 = vector.broadcast %31 : vector<1x32xf32> to vector<8x32xf32>
    %33 = arith.mulf %30, %32 : vector<8x32xf32>
    %c0_21 = arith.constant 0 : index
    %c0_22 = arith.constant 0 : index
    %34 = vector.load %arg7[%c0_21, %c0_22] : memref<1x32xf32, #tpu.memory_space<vmem>>, vector<1x32xf32>
    %35 = vector.broadcast %34 : vector<1x32xf32> to vector<8x32xf32>
    %36 = arith.addf %33, %35 : vector<8x32xf32>
    %37 = vector.broadcast %3 : vector<8x1xf32> to vector<8x32xf32>
    %38 = arith.mulf %36, %37 : vector<8x32xf32>
    %cst_23 = arith.constant 0.000000e+00 : f32
    %39 = vector.broadcast %cst_23 : f32 to vector<1x32xf32>
    %40 = vector.extract_strided_slice %38 {offsets = [0, 0], sizes = [7, 32], strides = [1, 1]} : vector<8x32xf32> to vector<7x32xf32>
    %41 = tpu.concatenate %39, %40 in 0 : vector<1x32xf32>, vector<7x32xf32> -> vector<8x32xf32>
    %42 = arith.truncf %41 : vector<8x32xf32> to vector<8x32xbf16>
    %c0_24 = arith.constant 0 : index
    %c0_25 = arith.constant 0 : index
    %c0_26 = arith.constant 0 : index
    %43 = vector.load %arg8[%c0_24, %c0_25, %c0_26] : memref<3x32x32xbf16, #tpu.memory_space<vmem>>, vector<1x32x32xbf16>
    %44 = vector.shape_cast %43 : vector<1x32x32xbf16> to vector<32x32xbf16>
    %cst_27 = arith.constant dense<0.000000e+00> : vector<8x32xf32>
    %45 = tpu.matmul %42, %44, %cst_27 {dimension_numbers = #tpu.dot_dimension_numbers<[1], [0], [0], [1], [0, 0, 1, 1], [], []>} : vector<8x32xbf16>, vector<32x32xbf16>, vector<8x32xf32> -> vector<8x32xf32>
    %46 = arith.truncf %38 : vector<8x32xf32> to vector<8x32xbf16>
    %c1_28 = arith.constant 1 : index
    %c0_29 = arith.constant 0 : index
    %c0_30 = arith.constant 0 : index
    %47 = vector.load %arg8[%c1_28, %c0_29, %c0_30] : memref<3x32x32xbf16, #tpu.memory_space<vmem>>, vector<1x32x32xbf16>
    %48 = vector.shape_cast %47 : vector<1x32x32xbf16> to vector<32x32xbf16>
    %cst_31 = arith.constant dense<0.000000e+00> : vector<8x32xf32>
    %49 = tpu.matmul %46, %48, %cst_31 {dimension_numbers = #tpu.dot_dimension_numbers<[1], [0], [0], [1], [0, 0, 1, 1], [], []>} : vector<8x32xbf16>, vector<32x32xbf16>, vector<8x32xf32> -> vector<8x32xf32>
    %50 = arith.addf %45, %49 : vector<8x32xf32>
    %cst_32 = arith.constant 0.000000e+00 : f32
    %51 = vector.broadcast %cst_32 : f32 to vector<1x32xf32>
    %52 = vector.extract_strided_slice %38 {offsets = [1, 0], sizes = [7, 32], strides = [1, 1]} : vector<8x32xf32> to vector<7x32xf32>
    %53 = tpu.concatenate %52, %51 in 0 : vector<7x32xf32>, vector<1x32xf32> -> vector<8x32xf32>
    %54 = arith.truncf %53 : vector<8x32xf32> to vector<8x32xbf16>
    %c2_33 = arith.constant 2 : index
    %c0_34 = arith.constant 0 : index
    %c0_35 = arith.constant 0 : index
    %55 = vector.load %arg8[%c2_33, %c0_34, %c0_35] : memref<3x32x32xbf16, #tpu.memory_space<vmem>>, vector<1x32x32xbf16>
    %56 = vector.shape_cast %55 : vector<1x32x32xbf16> to vector<32x32xbf16>
    %cst_36 = arith.constant dense<0.000000e+00> : vector<8x32xf32>
    %57 = tpu.matmul %54, %56, %cst_36 {dimension_numbers = #tpu.dot_dimension_numbers<[1], [0], [0], [1], [0, 0, 1, 1], [], []>} : vector<8x32xbf16>, vector<32x32xbf16>, vector<8x32xf32> -> vector<8x32xf32>
    %58 = arith.addf %50, %57 : vector<8x32xf32>
    %c0_37 = arith.constant 0 : index
    %c0_38 = arith.constant 0 : index
    %59 = vector.load %arg9[%c0_37, %c0_38] : memref<1x32xf32, #tpu.memory_space<vmem>>, vector<1x32xf32>
    %60 = vector.broadcast %59 : vector<1x32xf32> to vector<8x32xf32>
    %61 = arith.addf %58, %60 : vector<8x32xf32>
    %cst_39 = arith.constant 0.000000e+00 : f32
    %62 = vector.broadcast %cst_39 : f32 to vector<8x32xf32>
    %63 = arith.maximumf %61, %62 : vector<8x32xf32>
    %c0_40 = arith.constant 0 : index
    %c0_41 = arith.constant 0 : index
    %64 = vector.load %arg10[%c0_40, %c0_41] : memref<1x32xf32, #tpu.memory_space<vmem>>, vector<1x32xf32>
    %65 = vector.broadcast %64 : vector<1x32xf32> to vector<8x32xf32>
    %66 = arith.mulf %63, %65 : vector<8x32xf32>
    %c0_42 = arith.constant 0 : index
    %c0_43 = arith.constant 0 : index
    %67 = vector.load %arg11[%c0_42, %c0_43] : memref<1x32xf32, #tpu.memory_space<vmem>>, vector<1x32xf32>
    %68 = vector.broadcast %67 : vector<1x32xf32> to vector<8x32xf32>
    %69 = arith.addf %66, %68 : vector<8x32xf32>
    %70 = arith.truncf %69 : vector<8x32xf32> to vector<8x32xbf16>
    %c0_44 = arith.constant 0 : index
    %c0_45 = arith.constant 0 : index
    %71 = vector.load %arg12[%c0_44, %c0_45] : memref<32x128xbf16, #tpu.memory_space<vmem>>, vector<32x128xbf16>
    %cst_46 = arith.constant dense<0.000000e+00> : vector<8x128xf32>
    %72 = tpu.matmul %70, %71, %cst_46 {dimension_numbers = #tpu.dot_dimension_numbers<[1], [0], [0], [1], [0, 0, 1, 1], [], []>} : vector<8x32xbf16>, vector<32x128xbf16>, vector<8x128xf32> -> vector<8x128xf32>
    %c0_47 = arith.constant 0 : index
    %c0_48 = arith.constant 0 : index
    %73 = vector.load %arg13[%c0_47, %c0_48] : memref<1x128xf32, #tpu.memory_space<vmem>>, vector<1x128xf32>
    %74 = vector.broadcast %73 : vector<1x128xf32> to vector<8x128xf32>
    %75 = arith.addf %72, %74 : vector<8x128xf32>
    %cst_49 = arith.constant 0.000000e+00 : f32
    %76 = vector.broadcast %cst_49 : f32 to vector<8x128xf32>
    %77 = arith.maximumf %75, %76 : vector<8x128xf32>
    %78 = vector.extract_strided_slice %77 {offsets = [0, 0], sizes = [8, 32], strides = [1, 1]} : vector<8x128xf32> to vector<8x32xf32>
    %79 = vector.extract_strided_slice %77 {offsets = [0, 32], sizes = [8, 32], strides = [1, 1]} : vector<8x128xf32> to vector<8x32xf32>
    %80 = vector.extract_strided_slice %77 {offsets = [0, 64], sizes = [8, 32], strides = [1, 1]} : vector<8x128xf32> to vector<8x32xf32>
    %81 = vector.extract_strided_slice %77 {offsets = [0, 96], sizes = [8, 32], strides = [1, 1]} : vector<8x128xf32> to vector<8x32xf32>
    %c0_50 = arith.constant 0 : index
    %c0_51 = arith.constant 0 : index
    %82 = vector.load %arg14[%c0_50, %c0_51] : memref<1x32xf32, #tpu.memory_space<vmem>>, vector<1x32xf32>
    %83 = tpu.concatenate %82, %79 in 0 : vector<1x32xf32>, vector<8x32xf32> -> vector<9x32xf32>
    %c0_52 = arith.constant 0 : index
    %c0_53 = arith.constant 0 : index
    %84 = vector.load %arg15[%c0_52, %c0_53] : memref<1x32xf32, #tpu.memory_space<vmem>>, vector<1x32xf32>
    %85 = tpu.concatenate %84, %80 in 0 : vector<1x32xf32>, vector<8x32xf32> -> vector<9x32xf32>
    %86 = arith.truncf %78 : vector<8x32xf32> to vector<8x32xbf16>
    %c0_54 = arith.constant 0 : index
    %c0_55 = arith.constant 0 : index
    %87 = vector.load %arg16[%c0_54, %c0_55] : memref<32x32xbf16, #tpu.memory_space<vmem>>, vector<32x32xbf16>
    %cst_56 = arith.constant dense<0.000000e+00> : vector<8x32xf32>
    %88 = tpu.matmul %86, %87, %cst_56 {dimension_numbers = #tpu.dot_dimension_numbers<[1], [0], [0], [1], [0, 0, 1, 1], [], []>} : vector<8x32xbf16>, vector<32x32xbf16>, vector<8x32xf32> -> vector<8x32xf32>
    %89 = arith.truncf %88 : vector<8x32xf32> to vector<8x32xbf16>
    %90 = arith.truncf %83 : vector<9x32xf32> to vector<9x32xbf16>
    %cst_57 = arith.constant dense<0.000000e+00> : vector<8x9xf32>
    %91 = tpu.matmul %89, %90, %cst_57 {dimension_numbers = #tpu.dot_dimension_numbers<[1], [1], [0], [0], [0, 0, 1, 0], [], []>} : vector<8x32xbf16>, vector<9x32xbf16>, vector<8x9xf32> -> vector<8x9xf32>
    %c0_58 = arith.constant 0 : index
    %c0_59 = arith.constant 0 : index
    %c0_60 = arith.constant 0 : index
    %92 = vector.load %arg18[%c0_58, %c0_59, %c0_60] : memref<1x8x9xf32, #tpu.memory_space<vmem>>, vector<1x8x9xf32>
    %93 = vector.shape_cast %92 : vector<1x8x9xf32> to vector<8x9xf32>
    %94 = vector.shape_cast %91 : vector<8x9xf32> to vector<1x8x9xf32>
    tpu.vector_store %arg18[%c0_58, %c0_59, %c0_60], %94 {strides = array<i32>} : memref<1x8x9xf32, #tpu.memory_space<vmem>>, vector<1x8x9xf32>,
    %c0_61 = arith.constant 0 : index
    %c0_62 = arith.constant 0 : index
    %c0_63 = arith.constant 0 : index
    %95 = vector.load %arg3[%c0_61, %c0_62, %c0_63] : memref<1x1x9xf32, #tpu.memory_space<vmem>>, vector<1x1x9xf32>
    %96 = vector.shape_cast %95 : vector<1x1x9xf32> to vector<1x9xf32>
    %97 = vector.broadcast %3 : vector<8x1xf32> to vector<8x9xf32>
    %98 = vector.broadcast %96 : vector<1x9xf32> to vector<8x9xf32>
    %99 = arith.mulf %97, %98 : vector<8x9xf32>
    %cst_64 = arith.constant 0.000000e+00 : f32
    %100 = vector.broadcast %cst_64 : f32 to vector<8x9xf32>
    %101 = arith.cmpf ogt, %99, %100 : vector<8x9xf32>
    %cst_65 = arith.constant -3.40282347E+38 : f32
    %102 = vector.broadcast %cst_65 : f32 to vector<8x9xf32>
    %103 = arith.select %101, %91, %102 : vector<8x9xi1>, vector<8x9xf32>
    %cst_66 = arith.constant dense<0xFF800000> : vector<8xf32>
    %104 = vector.multi_reduction <maximumf>, %103, %cst_66 [1] : vector<8x9xf32> to vector<8xf32>
    %105 = vector.shape_cast %104 : vector<8xf32> to vector<8x1xf32>
    %106 = tpu.iota {dimensions = array<i32: 1>} : vector<8x9xi32>
    %107 = arith.sitofp %106 : vector<8x9xi32> to vector<8x9xf32>
    %108 = vector.broadcast %105 : vector<8x1xf32> to vector<8x9xf32>
    %109 = arith.cmpf oge, %103, %108 : vector<8x9xf32>
    %cst_67 = arith.constant 9.000000e+00 : f32
    %110 = vector.broadcast %cst_67 : f32 to vector<8x9xf32>
    %111 = arith.select %109, %107, %110 : vector<8x9xi1>, vector<8x9xf32>
    %cst_68 = arith.constant dense<0x7F800000> : vector<8xf32>
    %112 = vector.multi_reduction <minimumf>, %111, %cst_68 [1] : vector<8x9xf32> to vector<8xf32>
    %113 = vector.shape_cast %112 : vector<8xf32> to vector<8x1xf32>
    %114 = vector.broadcast %113 : vector<8x1xf32> to vector<8x9xf32>
    %115 = arith.cmpf oeq, %107, %114 : vector<8x9xf32>
    %116 = arith.extui %115 : vector<8x9xi1> to vector<8x9xi32>
    %117 = arith.sitofp %116 : vector<8x9xi32> to vector<8x9xf32>
    %cst_69 = arith.constant dense<0.000000e+00> : vector<8x32xf32>
    %118 = tpu.matmul %117, %85, %cst_69 {dimension_numbers = #tpu.dot_dimension_numbers<[1], [0], [0], [1], [0, 0, 1, 1], [], []>} : vector<8x9xf32>, vector<9x32xf32>, vector<8x32xf32> -> vector<8x32xf32>
    %119 = arith.truncf %118 : vector<8x32xf32> to vector<8x32xbf16>
    %c0_70 = arith.constant 0 : index
    %c0_71 = arith.constant 0 : index
    %120 = vector.load %arg17[%c0_70, %c0_71] : memref<32x256xbf16, #tpu.memory_space<vmem>>, vector<32x256xbf16>
    %cst_72 = arith.constant dense<0.000000e+00> : vector<8x256xf32>
    %121 = tpu.matmul %119, %120, %cst_72 {dimension_numbers = #tpu.dot_dimension_numbers<[1], [0], [0], [1], [0, 0, 1, 1], [], []>} : vector<8x32xbf16>, vector<32x256xbf16>, vector<8x256xf32> -> vector<8x256xf32>
    %122 = vector.extract_strided_slice %121 {offsets = [0, 0], sizes = [8, 32], strides = [1, 1]} : vector<8x256xf32> to vector<8x32xf32>
    %123 = arith.mulf %122, %81 : vector<8x32xf32>
    %cst_73 = arith.constant dense<0.000000e+00> : vector<8xf32>
    %124 = vector.multi_reduction <add>, %123, %cst_73 [1] : vector<8x32xf32> to vector<8xf32>
    %125 = vector.shape_cast %124 : vector<8xf32> to vector<8x1xf32>
    %126 = vector.extract_strided_slice %121 {offsets = [0, 32], sizes = [8, 32], strides = [1, 1]} : vector<8x256xf32> to vector<8x32xf32>
    %127 = arith.mulf %126, %81 : vector<8x32xf32>
    %cst_74 = arith.constant dense<0.000000e+00> : vector<8xf32>
    %128 = vector.multi_reduction <add>, %127, %cst_74 [1] : vector<8x32xf32> to vector<8xf32>
    %129 = vector.shape_cast %128 : vector<8xf32> to vector<8x1xf32>
    %130 = vector.extract_strided_slice %121 {offsets = [0, 64], sizes = [8, 32], strides = [1, 1]} : vector<8x256xf32> to vector<8x32xf32>
    %131 = arith.mulf %130, %81 : vector<8x32xf32>
    %cst_75 = arith.constant dense<0.000000e+00> : vector<8xf32>
    %132 = vector.multi_reduction <add>, %131, %cst_75 [1] : vector<8x32xf32> to vector<8xf32>
    %133 = vector.shape_cast %132 : vector<8xf32> to vector<8x1xf32>
    %134 = vector.extract_strided_slice %121 {offsets = [0, 96], sizes = [8, 32], strides = [1, 1]} : vector<8x256xf32> to vector<8x32xf32>
    %135 = arith.mulf %134, %81 : vector<8x32xf32>
    %cst_76 = arith.constant dense<0.000000e+00> : vector<8xf32>
    %136 = vector.multi_reduction <add>, %135, %cst_76 [1] : vector<8x32xf32> to vector<8xf32>
    %137 = vector.shape_cast %136 : vector<8xf32> to vector<8x1xf32>
    %138 = vector.extract_strided_slice %121 {offsets = [0, 128], sizes = [8, 32], strides = [1, 1]} : vector<8x256xf32> to vector<8x32xf32>
    %139 = arith.mulf %138, %81 : vector<8x32xf32>
    %cst_77 = arith.constant dense<0.000000e+00> : vector<8xf32>
    %140 = vector.multi_reduction <add>, %139, %cst_77 [1] : vector<8x32xf32> to vector<8xf32>
    %141 = vector.shape_cast %140 : vector<8xf32> to vector<8x1xf32>
    %142 = vector.extract_strided_slice %121 {offsets = [0, 160], sizes = [8, 32], strides = [1, 1]} : vector<8x256xf32> to vector<8x32xf32>
    %143 = arith.mulf %142, %81 : vector<8x32xf32>
    %cst_78 = arith.constant dense<0.000000e+00> : vector<8xf32>
    %144 = vector.multi_reduction <add>, %143, %cst_78 [1] : vector<8x32xf32> to vector<8xf32>
    %145 = vector.shape_cast %144 : vector<8xf32> to vector<8x1xf32>
    %146 = vector.extract_strided_slice %121 {offsets = [0, 192], sizes = [8, 32], strides = [1, 1]} : vector<8x256xf32> to vector<8x32xf32>
    %147 = arith.mulf %146, %81 : vector<8x32xf32>
    %cst_79 = arith.constant dense<0.000000e+00> : vector<8xf32>
    %148 = vector.multi_reduction <add>, %147, %cst_79 [1] : vector<8x32xf32> to vector<8xf32>
    %149 = vector.shape_cast %148 : vector<8xf32> to vector<8x1xf32>
    %150 = vector.extract_strided_slice %121 {offsets = [0, 224], sizes = [8, 32], strides = [1, 1]} : vector<8x256xf32> to vector<8x32xf32>
    %151 = arith.mulf %150, %81 : vector<8x32xf32>
    %cst_80 = arith.constant dense<0.000000e+00> : vector<8xf32>
    %152 = vector.multi_reduction <add>, %151, %cst_80 [1] : vector<8x32xf32> to vector<8xf32>
    %153 = vector.shape_cast %152 : vector<8xf32> to vector<8x1xf32>
    %154 = tpu.concatenate %125, %129, %133, %137, %141, %145, %149, %153 in 1 : vector<8x1xf32>, vector<8x1xf32>, vector<8x1xf32>, vector<8x1xf32>, vector<8x1xf32>, vector<8x1xf32>, vector<8x1xf32>, vector<8x1xf32> -> vector<8x8xf32>
    %c0_81 = arith.constant 0 : index
    %c0_82 = arith.constant 0 : index
    %c0_83 = arith.constant 0 : index
    %155 = vector.load %arg19[%c0_81, %c0_82, %c0_83] : memref<1x8x8xf32, #tpu.memory_space<vmem>>, vector<1x8x8xf32>
    %156 = vector.shape_cast %155 : vector<1x8x8xf32> to vector<8x8xf32>
    %157 = vector.shape_cast %154 : vector<8x8xf32> to vector<1x8x8xf32>
    tpu.vector_store %arg19[%c0_81, %c0_82, %c0_83], %157 {strides = array<i32>} : memref<1x8x8xf32, #tpu.memory_space<vmem>>, vector<1x8x8xf32>,
    return
  }
  func.func @transform_0(%arg0: i32) -> (i32, i32, i32) {
    %c0_i32 = arith.constant 0 : i32
    %c0_i32_0 = arith.constant 0 : i32
    %c0_i32_1 = arith.constant 0 : i32
    return %arg0, %c0_i32, %c0_i32_0 : i32, i32, i32
  }
  func.func @transform_1(%arg0: i32) -> (i32, i32, i32) {
    %c0_i32 = arith.constant 0 : i32
    %c0_i32_0 = arith.constant 0 : i32
    %c0_i32_1 = arith.constant 0 : i32
    return %arg0, %c0_i32, %c0_i32_0 : i32, i32, i32
  }
  func.func @transform_2(%arg0: i32) -> (i32, i32, i32) {
    %c0_i32 = arith.constant 0 : i32
    %c0_i32_0 = arith.constant 0 : i32
    %c0_i32_1 = arith.constant 0 : i32
    return %arg0, %c0_i32, %c0_i32_0 : i32, i32, i32
  }
  func.func @transform_3(%arg0: i32) -> (i32, i32, i32) {
    %c0_i32 = arith.constant 0 : i32
    %c0_i32_0 = arith.constant 0 : i32
    %c0_i32_1 = arith.constant 0 : i32
    %c0_i32_2 = arith.constant 0 : i32
    return %c0_i32, %c0_i32_0, %c0_i32_1 : i32, i32, i32
  }
  func.func @transform_4(%arg0: i32) -> (i32, i32) {
    %c0_i32 = arith.constant 0 : i32
    %c0_i32_0 = arith.constant 0 : i32
    %c0_i32_1 = arith.constant 0 : i32
    return %c0_i32, %c0_i32_0 : i32, i32
  }
  func.func @transform_5(%arg0: i32) -> (i32, i32) {
    %c0_i32 = arith.constant 0 : i32
    %c0_i32_0 = arith.constant 0 : i32
    %c0_i32_1 = arith.constant 0 : i32
    return %c0_i32, %c0_i32_0 : i32, i32
  }
  func.func @transform_6(%arg0: i32) -> (i32, i32) {
    %c0_i32 = arith.constant 0 : i32
    %c0_i32_0 = arith.constant 0 : i32
    %c0_i32_1 = arith.constant 0 : i32
    return %c0_i32, %c0_i32_0 : i32, i32
  }
  func.func @transform_7(%arg0: i32) -> (i32, i32, i32) {
    %c0_i32 = arith.constant 0 : i32
    %c0_i32_0 = arith.constant 0 : i32
    %c0_i32_1 = arith.constant 0 : i32
    %c0_i32_2 = arith.constant 0 : i32
    return %c0_i32, %c0_i32_0, %c0_i32_1 : i32, i32, i32
  }
  func.func @transform_8(%arg0: i32) -> (i32, i32) {
    %c0_i32 = arith.constant 0 : i32
    %c0_i32_0 = arith.constant 0 : i32
    %c0_i32_1 = arith.constant 0 : i32
    return %c0_i32, %c0_i32_0 : i32, i32
  }
  func.func @transform_9(%arg0: i32) -> (i32, i32) {
    %c0_i32 = arith.constant 0 : i32
    %c0_i32_0 = arith.constant 0 : i32
    %c0_i32_1 = arith.constant 0 : i32
    return %c0_i32, %c0_i32_0 : i32, i32
  }
  func.func @transform_10(%arg0: i32) -> (i32, i32) {
    %c0_i32 = arith.constant 0 : i32
    %c0_i32_0 = arith.constant 0 : i32
    %c0_i32_1 = arith.constant 0 : i32
    return %c0_i32, %c0_i32_0 : i32, i32
  }
  func.func @transform_11(%arg0: i32) -> (i32, i32) {
    %c0_i32 = arith.constant 0 : i32
    %c0_i32_0 = arith.constant 0 : i32
    %c0_i32_1 = arith.constant 0 : i32
    return %c0_i32, %c0_i32_0 : i32, i32
  }
  func.func @transform_12(%arg0: i32) -> (i32, i32) {
    %c0_i32 = arith.constant 0 : i32
    %c0_i32_0 = arith.constant 0 : i32
    %c0_i32_1 = arith.constant 0 : i32
    return %c0_i32, %c0_i32_0 : i32, i32
  }
  func.func @transform_13(%arg0: i32) -> (i32, i32) {
    %c0_i32 = arith.constant 0 : i32
    %c0_i32_0 = arith.constant 0 : i32
    %c0_i32_1 = arith.constant 0 : i32
    return %c0_i32, %c0_i32_0 : i32, i32
  }
  func.func @transform_14(%arg0: i32) -> (i32, i32) {
    %c0_i32 = arith.constant 0 : i32
    %c0_i32_0 = arith.constant 0 : i32
    %c0_i32_1 = arith.constant 0 : i32
    return %c0_i32, %c0_i32_0 : i32, i32
  }
  func.func @transform_15(%arg0: i32) -> (i32, i32) {
    %c0_i32 = arith.constant 0 : i32
    %c0_i32_0 = arith.constant 0 : i32
    %c0_i32_1 = arith.constant 0 : i32
    return %c0_i32, %c0_i32_0 : i32, i32
  }
  func.func @transform_16(%arg0: i32) -> (i32, i32) {
    %c0_i32 = arith.constant 0 : i32
    %c0_i32_0 = arith.constant 0 : i32
    %c0_i32_1 = arith.constant 0 : i32
    return %c0_i32, %c0_i32_0 : i32, i32
  }
  func.func @transform_17(%arg0: i32) -> (i32, i32, i32) {
    %c0_i32 = arith.constant 0 : i32
    %c0_i32_0 = arith.constant 0 : i32
    %c0_i32_1 = arith.constant 0 : i32
    return %arg0, %c0_i32, %c0_i32_0 : i32, i32, i32
  }
  func.func @transform_18(%arg0: i32) -> (i32, i32, i32) {
    %c0_i32 = arith.constant 0 : i32
    %c0_i32_0 = arith.constant 0 : i32
    %c0_i32_1 = arith.constant 0 : i32
    return %arg0, %c0_i32, %c0_i32_0 : i32, i32, i32
  }
}

</mosaic_0001>

<bundles_post_ra>
// kernel: syntax_forward.1
= control target key start
LH: loop header
LB: loop body
LE: loop exit
PB: predicated region body
PF: predicated region fallthrough
CT: control target
= control target key end

     0   :  { %s2428_s0 = inlined_call_operand.vmem [shape: f32[2,8,32], index: 0, kind: input, shape index: {}]   ;;  %s2429_s1 = inlined_call_operand.vmem [shape: f32[2,8,1], index: 1, kind: input, shape index: {}]   ;;  %s2430_s2 = inlined_call_operand.vmem [shape: f32[2,1,9], index: 2, kind: input, shape index: {}]   ;;  %s2431_s3 = inlined_call_operand.vmem [shape: bf16[3,32,32], index: 3, kind: input, shape index: {}]   ;;  %s2432_s4 = inlined_call_operand.vmem [shape: f32[1,32], index: 4, kind: input, shape index: {}]   ;;  %s2433_s5 = inlined_call_operand.vmem [shape: f32[1,32], index: 5, kind: input, shape index: {}]   ;;  %s2434_s6 = inlined_call_operand.vmem [shape: f32[1,32], index: 6, kind: input, shape index: {}]   ;;  %s2435_s7 = inlined_call_operand.vmem [shape: bf16[3,32,32], index: 7, kind: input, shape index: {}]   ;;  %s2436_s8 = inlined_call_operand.vmem [shape: f32[1,32], index: 8, kind: input, shape index: {}]   ;;  %s2437_s9 = inlined_call_operand.vmem [shape: f32[1,32], index: 9, kind: input, shape index: {}]   ;;  %s2438_s10 = inlined_call_operand.vmem [shape: f32[1,32], index: 10, kind: input, shape index: {}]   ;;  %s2439_s11 = inlined_call_operand.vmem [shape: bf16[32,128], index: 11, kind: input, shape index: {}]   ;;  %s2440_s12 = inlined_call_operand.vmem [shape: f32[1,128], index: 12, kind: input, shape index: {}]   ;;  %s2441_s13 = inlined_call_operand.vmem [shape: f32[1,32], index: 13, kind: input, shape index: {}]   ;;  %s2442_s14 = inlined_call_operand.vmem [shape: f32[1,32], index: 14, kind: input, shape index: {}]   ;;  %s2443_s15 = inlined_call_operand.vmem [shape: bf16[32,32], index: 15, kind: input, shape index: {}]   ;;  %s2444_s16 = inlined_call_operand.vmem [shape: bf16[32,256], index: 16, kind: input, shape index: {}]   ;;  %s2445_s17 = inlined_call_operand.hbm [shape: f32[2,8,9], index: 17, kind: output, shape index: {0}]   ;;  %s2446_s18 = inlined_call_operand.hbm [shape: f32[2,8,8], index: 18, kind: output, shape index: {1}]  }
   0x1   :  { %2457 = sst [smem:[#allocation14_spill]] %s2428_s0 }
   0x2   :  { %2458 = sst [smem:[#allocation15_spill]] %s2429_s1 }
   0x3   :  { %2459 = sst [smem:[#allocation16_spill]] %s2430_s2 }
   0x4   :  { %24 = vsyncpa [#allocation3], 0 }
   0x5   :  { %26 = vsyncpa [#allocation3 + $0x1], 0 }
   0x6   :  { %27 = vsyncpa [#allocation5], 0 }
   0x7   :  { %29 = vsyncpa [#allocation5 + $0x1], 0  ;;  %s2096_s27 = smov 0   ;;  %s2098_s28 = smov 0  }
   0x8   :  { %s2100_s29 = smov 0   ;;  %s2102_s30 = smov 0  }
   0x9 LB: > { %2460 = sst [smem:[#allocation8_spill]] %s1977_s27  ;;  %s2117_s0 = sadd.s32 4294967295, %s1989_s30   ;;  %s1989_s30 = sphi %s2102_s30, %s2477_s30   ;;  %s1985_s29 = sphi %s2100_s29, %s2479_s29   ;;  %s1981_s28 = sphi %s2098_s28, %s2481_s28   ;;  %s1977_s27 = sphi %s2096_s27, %s2480_s27  }
   0xa   : > { %2461 = sst [smem:[#allocation9_spill]] %s1985_s29  ;;  %s1639_s19 = sadd.s32 4294967294, %s1989_s30  }
   0xb   : > { %2462 = sst [smem:[#allocation10_spill]] %s1989_s30  ;;  %s2121_s1 = sadd.s32 1, %s1989_s30  }
   0xc   : > { %2463 = sst [smem:[#allocation11_spill]] %s2121_s1  ;;  %s414_s20 = sadd.s32 1, %s1985_s29 }
   0xd   : > { %s411_s21 = ssub.s32 %s1989_s30, %s2121_s1  ;;  %p424_p0 = scmp.ne.s32.totalorder %s1985_s29, %s1981_s28 }
   0xe   : > { %p412_p1 = scmp.eq.s32.totalorder %s411_s21, 0  ;;  %p425_p2 = scmp.eq.s32.totalorder %s2117_s0, 1 }
   0xf   : > { %p430_p3 = scmp.ne.s32.totalorder %s1981_s28, %s1977_s27  ;;  %p431_p4 = scmp.eq.s32.totalorder %s1639_s19, 1 }
  0x10   : > { %s2132_s22 = scalar_select %p412_p1, %s1985_s29, %s414_s20  }
  0x11   : > { %p2134_p5 = por %p425_p2, %p424_p0  ;;  %p2138_p6 = por %p431_p4, %p430_p3 }
  0x12   : > { %2464 = sst [smem:[#allocation12_spill]] %s2132_s22  ;;  %p1642_p7 = scmp.ge.s32.totalorder %s1989_s30, 1 }
  0x13   : > { %s2466_s23 = scalar_select %p2138_p6, 1, 0 }
  0x14   : > { %p537_p8 = scmp.lt.s32.totalorder %s1989_s30, 3 }
  0x15   : > { %2467 = sst [smem:[#allocation13_spill]] %s2466_s23 }
  0x16   : > { %p538_p9 = pnand %p1642_p7, %p537_p8 }
  0x17   : > { %p602_p10 = scmp.lt.s32.totalorder (!%p538_p9), %s2117_s0, 1  ;;  %v1873_v0 = vld [vmem:[%s2431_s3 + $0x10] sm:$0xff] (!%p538_p9)   ;;  %v1991_v1 = vmov (!%p538_p9), 0   ;;  %v1992_v2 = vmov (!%p538_p9), 0.0   ;;  %s2468_s22 = sld [smem:[#allocation15_spill]] (!%p538_p9)  ;;  %v1875_v3 = vld [vmem:[%s2431_s3 + $0x20] sm:$0xff] (!%p538_p9)  }
  0x18   : > { %541 = sbr.rel (%p538_p9) target bundleno = 2342 (0x926), region = 88  ;;  %1872 = vset.pattern.permute.xlu0 (!%p538_p9), %v1991_v1  ;;  %1739 = vmatprep.subr.bf16.mxu1 (!%p538_p9), %v1992_v2  ;;  %v1874_v5 = vld [vmem:[%s2431_s3 + $0x18] sm:$0xff] (!%p538_p9)   ;;  %v1877_v6 = vld [vmem:[%s2431_s3 + $0x28] sm:$0xff] (!%p538_p9)   ;;  %vm1993_vm0 = vmmov (!%p538_p9), 0   ;;  %vm650_vm1 = vcmask (!%p538_p9), 261120   ;;  %v1876_v10 = vld [vmem:[%s2431_s3] sm:$0xff] (!%p538_p9)  }
  0x19   : > { %1740 = vmatpush3.bf16.msra.mxu1 (!%p538_p9), %v1873_v0  ;;  %1755 = vmatprep.subr.bf16.mxu0 (!%p538_p9), %v1992_v2  ;;  %vm751_vm2 = vcmask (!%p538_p9), 1046528   ;;  %vm625_vm3 = vcmask (!%p538_p9), 1040384   ;;  %v1878_v16 = vld [vmem:[%s2431_s3 + $0x8] sm:$0xff] (!%p538_p9)   ;;  %v1879_v19 = vld [vmem:[%s2435_s7 + $0x10] sm:$0xff] (!%p538_p9)   ;;  %v1881_v20 = vld [vmem:[%s2435_s7] sm:$0xff] (!%p538_p9)   ;;  %s1996_s25 = smov (!%p538_p9), 64  }
  0x1a   : > { %1741 = vmatprep.subr.bf16.mxu1 (!%p538_p9), %v1992_v2  ;;  %1756 = vmatpush3.bf16.msra.mxu0 (!%p538_p9), %v1875_v3  ;;  %v1880_v21 = vld [vmem:[%s2435_s7 + $0x18] sm:$0xff] (!%p538_p9)   ;;  %v1882_v22 = vld [vmem:[%s2435_s7 + $0x8] sm:$0xff] (!%p538_p9)   ;;  %v1664_v34 = vld [vmem:[%s2432_s4] ss:$0 sm:$0xff] (!%p538_p9)  ;;  %s2454_s29 = smov (!%p538_p9), 32   ;;  %vm1998_vm4 = vmmov (!%p538_p9), 1  }
  0x1b   : > { %1757 = vmatprep.subr.bf16.mxu0 (!%p538_p9), %v1992_v2  ;;  %1743 = vmatprep.mubr.msk.bf16.mxu1 (!%p538_p9), %vm1993_vm0, %v1992_v2  ;;  %v1665_v39 = vld [vmem:[%s2433_s5] ss:$0 sm:$0xff] (!%p538_p9)  ;;  %v1884_v51 = vld [vmem:[%s2435_s7 + $0x28] sm:$0xff] (!%p538_p9)   ;;  %vm1818_vm5 = vmpackc.low (!%p538_p9), %vm625_vm3, %vm1998_vm4  ;;  %s2470_s20 = sld [smem:[#allocation16_spill]] (!%p538_p9)  ;;  %s2306_s1 = sand.u32 (!%p538_p9), 1, %s1981_s28   ;;  %vm1244_vm6 = vcmask (!%p538_p9), 72704  }
  0x1c   : > { %1759 = vmatprep.mubr.msk.bf16.mxu0 (!%p538_p9), %vm1993_vm0, %v1992_v2  ;;  %v1666_v41 = vld [vmem:[%s2434_s6] ss:$0 sm:$0xff] (!%p538_p9)  ;;  %v1886_v55 = vld [vmem:[%s2439_s11 + $0x8] sm:$0xff] (!%p538_p9)   ;;  %s1496_s30 = scalar_lea.sflag (!%p538_p9), [#allocation3], %s2306_s1 }
  0x1d   : > { %1742 = vmatpush3.bf16.msra.mxu1 (!%p538_p9), %v1874_v5  ;;  %v1883_v45 = vld [vmem:[%s2435_s7 + $0x20] sm:$0xff] (!%p538_p9)  }
  0x1e   : > { %1747 = vmatprep.subr.bf16.mxu1 (!%p538_p9), %v1992_v2  ;;  %1758 = vmatpush3.bf16.msra.mxu0 (!%p538_p9), %v1877_v6  ;;  %v1885_v54 = vld [vmem:[%s2439_s11] sm:$0xff] (!%p538_p9)  }
  0x1f   : > { %s2151_s26 = scalar_select %p602_p10, %s2117_s0, 1  ;;  %1771 = vmatprep.subr.bf16.mxu0 %v1992_v2  ;;  %v1887_v56 = vld [vmem:[%s2443_s15] sm:$0xff]  }
  0x20   : > { %v1684_v5 = vld [vmem:[%s2436_s8] ss:$0 sm:$0xff] }
  0x21   : > { %s1645_s19 = sshll.u32 %s2151_s26, 3  ;;  %s612_s21 = scalar_lea.vmem %s2470_s20, %s2151_s26 }
  0x22   : > { %s609_s24 = scalar_lea.vmem %s2468_s22, %s1645_s19  ;;  %s2469_s22 = sld [smem:[#allocation14_spill]] }
  0x23   : > { %v615_v4 = vld [vmem:[%s609_s24] sm:$0xff]  ;;  %s1995_s24 = smov 96   ;;  %s1999_s20 = smov [#allocation2]  }
  0x24   : > { %618 = vperm.xlu0 %1872, %v615_v4  }
  0x28   : > { %s605_s23 = scalar_lea.vmem %s2469_s22, %s1645_s19  ;;  %s2453_s22 = sshll.u32 %s2306_s1, 3 }
  0x29   : > { %v614_v7 = vld [vmem:[%s605_s23] sm:$0xff]  ;;  %s2312_s23 = scalar_lea.vmem [#allocation2], %s2453_s22 }
  0x2a   : > { %s1514_s27 = sshll.u32 %s2312_s23, 4  ;;  %s1515_s27 = int_to_ptr.vmem [resolvable:$true] %s1514_s27 }
  0x2b   : > { %s1895_s19 = scalar_lea.vmem %s1515_s27, 128 }
  0x2c   : > { %p1896_p11 = scmp.ne.s32.totalorder %s1515_s27, %s1895_s19 }
  0x2e   : > { %p1897_p12 = pnand %p1896_p11, %p2134_p5 }
  0x30   : > { %p1898_p13 = pneg %p1897_p12 }
  0xa3   : > { %v2178_v8 = vpop.permute.xlu0 %618 }
  0xa4   : > { %v621_v9 = vmul.f32 %v2178_v8, %v614_v7 }
  0xa6   : > { %v749_v11 = vrot.slane %v621_v9, 1  ;;  %v632_v12 = vpack.c.bf16 %v621_v9, %v621_v9  ;;  %v623_v13 = vrot.slane %v621_v9, 7 }
  0xa8   : > { %1744 = vmatmul.mubr.msk.bf16.vlgmr.msra.gmra.mrb[0].mxu1 %vm650_vm1, %v632_v12  ;;  %v752_v14 = vsel %vm751_vm2, %v749_v11, 0.0  ;;  %v626_v17 = vsel %vm625_vm3, 0.0, %v623_v13  ;;  %v1685_v12 = vld [vmem:[%s2437_s9] ss:$0 sm:$0xff] }
  0xa9   : > { %1748 = vmatpush3.bf16.msra.mxu1 %v1876_v10  ;;  %v753_v15 = vpack.c.bf16 %v752_v14, %v752_v14  ;;  %1751 = vmatprep.mubr.msk.bf16.mxu1 %vm1993_vm0, %v1992_v2  ;;  %v627_v18 = vpack.c.bf16 %v626_v17, %v626_v17  ;;  %v1686_v14 = vld [vmem:[%s2438_s10] ss:$0 sm:$0xff] }
  0xaa   : > { %1749 = vmatprep.subr.bf16.mxu1 %v1992_v2 }
  0xab   : > { %1760 = vmatmul.mubr.msk.bf16.vlgmr.msra.gmra.mrb[0].mxu0 %vm650_vm1, %v753_v15 }
  0xac   : > { %1775 = vmatprep.mubr.msk.bf16.mxu0 %vm1993_vm0, %v1992_v2  ;;  %1772 = vmatpush3.bf16.msra.mxu0 %v1881_v20 }
  0xad   : > { %1750 = vmatpush3.bf16.msra.mxu1 %v1878_v16  ;;  %1773 = vmatprep.subr.bf16.mxu0 %v1992_v2 }
  0xae   : > { %1763 = vmatprep.subr.bf16.mxu1 %v1992_v2 }
  0xb0   : > { %1752 = vmatmul.mubr.msk.bf16.vlgmr.msra.gmra.mrb[4].mxu1 %vm650_vm1, %v627_v18  ;;  %1774 = vmatpush3.bf16.msra.mxu0 %v1882_v22  ;;  %v1888_v18 = vld [vmem:[%s2443_s15 + $0x8] sm:$0xff]  }
  0xb1   : > { %1767 = vmatprep.mubr.msk.bf16.mxu1 %vm1993_vm0, %v1992_v2  ;;  %1764 = vmatpush3.bf16.msra.mxu1 %v1879_v19  ;;  %v1687_v19 = vld [vmem:[%s2440_s12] ss:$0 sm:$0xff] }
  0xb2   : > { %1765 = vmatprep.subr.bf16.mxu1 %v1992_v2  ;;  %1787 = vmatprep.subr.bf16.mxu0 %v1992_v2 }
  0xb5   : > { %1766 = vmatpush3.bf16.msra.mxu1 %v1880_v21  ;;  %v1994_v21 = vmov 0.0|0.0  }
  0xb6   : > { %1779 = vmatprep.subr.bf16.mxu1 %v1992_v2 }
 0x17b   : > { %v688_v23 = vpop.f32.mrb[0].mxu1 }
 0x17c   : > { %v1745_v24 = vpop.f32.mrb[1].mxu1 }
 0x17d   : > { %v691_v25 = vpop.f32.mrb[2].mxu1 }
 0x17e   : > { %v1746_v26 = vpop.f32.mrb[3].mxu1  ;;  %v808_v27 = vpop.f32.mrb[0].mxu0 }
 0x17f   : > { %v1761_v28 = vpop.f32.mrb[1].mxu0 }
 0x180   : > { %v811_v29 = vpop.f32.mrb[2].mxu0 }
 0x181   : > { %v1762_v30 = vpop.f32.mrb[3].mxu0  ;;  %v1124_v29 = vld [vmem:[%s2441_s13] sm:$0x1] }
 0x183   : > { %v743_v31 = vpop.f32.mrb[4].mxu1 }
 0x184   : > { %v744_v32 = vadd.f32 %v743_v31, %v688_v23  ;;  %v1753_v33 = vpop.f32.mrb[5].mxu1 }
 0x185   : > { %v746_v35 = vpop.f32.mrb[6].mxu1  ;;  %v1131_v33 = vld [vmem:[%s2442_s14] sm:$0x1] }
 0x186   : > { %v814_v36 = vadd.f32 %v808_v27, %v744_v32  ;;  %v1754_v37 = vpop.f32.mrb[7].mxu1 }
 0x188   : > { %v822_v38 = vadd.f32 %v1664_v34, %v814_v36 }
 0x18a   : > { %v823_v40 = vmax.f32 %v822_v38, 0.0 }
 0x18c   : > { %v831_v42 = vmul.f32 %v1665_v39, %v823_v40 }
 0x18e   : > { %v839_v43 = vadd.f32 %v1666_v41, %v831_v42 }
 0x190   : > { %v840_v44 = vmul.f32 %v839_v43, %v2178_v8  ;;  %v1695_v43 = vld [vmem:[%s612_s21] ss:$0 sm:$0xff]  ;;  %s1899_s21 = sshll.u32 %s1999_s20, 4  ;;  %s1900_s21 = int_to_ptr.vmem [resolvable:$false] %s1899_s21 }
 0x191   : > { %p1902_p0 = scmp.lt.s32.totalorder %s1515_s27, %s1900_s21 }
 0x192   : > { %v850_v46 = vpack.c.bf16 %v840_v44, %v840_v44  ;;  %v842_v47 = vrot.slane %v840_v44, 7  ;;  %v966_v48 = vrot.slane %v840_v44, 1  ;;  %v1253_v44 = vmul.f32 %v1695_v43, %v2178_v8 }
 0x194   : > { %1768 = vmatmul.mubr.msk.bf16.vlgmr.msra.gmra.mrb[8].mxu1 %vm650_vm1, %v850_v46  ;;  %v844_v49 = vsel %vm625_vm3, 0.0, %v842_v47  ;;  %v968_v52 = vsel %vm751_vm2, %v966_v48, 0.0  ;;  %vm1254_vm7 = vcmp.gt.f32.partialorder %v1253_v44, 0.0 }
 0x195   : > { %1780 = vmatpush3.bf16.msra.mxu1 %v1883_v45  ;;  %v845_v50 = vpack.c.bf16 %v844_v49, %v844_v49  ;;  %1783 = vmatprep.mubr.msk.bf16.mxu1 %vm1993_vm0, %v1992_v2  ;;  %v969_v53 = vpack.c.bf16 %v968_v52, %v968_v52 }
 0x196   : > { %1781 = vmatprep.subr.bf16.mxu1 %v1992_v2 }
 0x197   : > { %1776 = vmatmul.mubr.msk.bf16.vlgmr.msra.gmra.mrb[4].mxu0 %vm650_vm1, %v845_v50  ;;  %v1259_v50 = vlaneseq }
 0x198   : > { %1791 = vmatprep.mubr.msk.bf16.mxu0 %vm1993_vm0, %v1992_v2  ;;  %1788 = vmatpush3.bf16.msra.mxu0 %v1885_v54 }
 0x199   : > { %1782 = vmatpush3.bf16.msra.mxu1 %v1884_v51  ;;  %1789 = vmatprep.subr.bf16.mxu0 %v1992_v2  ;;  %v1260_v51 = vand.u32 127, %v1259_v50 }
 0x19a   : > { %1795 = vmatprep.subr.bf16.mxu1 %v1992_v2 }
 0x19b   : > { %v1261_v52 = vcvt.s32.f32 %v1260_v51 }
 0x19c   : > { %1784 = vmatmul.mubr.msk.bf16.vlgmr.msra.gmra.mrb[12].mxu1 %vm650_vm1, %v969_v53  ;;  %1790 = vmatpush3.bf16.msra.mxu0 %v1886_v55  ;;  %v1889_v55 = vld [vmem:[%s2444_s16] ss:$8 sps:$4 sm:$0xff]  }
 0x19d   : > { %1799 = vmatprep.mubr.msk.bf16.mxu1 %vm1993_vm0, %v1992_v2  ;;  %1803 = vmatprep.subr.bf16.mxu0 %v1992_v2 }
 0x19e   : > { %1796 = vmatpush3.bf16.msra.mxu1 %v1887_v56  ;;  %v1891_v56 = vld [vmem:[%s2444_s16 + $0x4] ss:$8 sps:$4 sm:$0xff]  }
 0x19f   : > { %1797 = vmatprep.subr.bf16.mxu1 %v1992_v2 }
 0x1a2   : > { %1798 = vmatpush3.bf16.msra.mxu1 %v1888_v18 }
 0x1a3   : > { %1816 = vmatprep.subr.bf16.mxu1 %v1994_v21 }
 0x267   : > { %v905_v57 = vpop.f32.mrb[8].mxu1 }
 0x268   : > { %v1769_v58 = vpop.f32.mrb[9].mxu1 }
 0x269   : > { %v908_v59 = vpop.f32.mrb[10].mxu1  ;;  %v1892_v58 = vld [vmem:[%s2444_s16 + $0x10] ss:$8 sps:$4 sm:$0xff]  }
 0x26a   : > { %v1770_v60 = vpop.f32.mrb[11].mxu1  ;;  %v960_v61 = vpop.f32.mrb[4].mxu0 }
 0x26b   : > { %v961_v62 = vadd.f32 %v960_v61, %v905_v57  ;;  %v1777_v63 = vpop.f32.mrb[5].mxu0  ;;  %v1894_v57 = vld [vmem:[%s2444_s16 + $0x14] ss:$8 sps:$4 sm:$0xff]  }
 0x26c   : > { %v963_v0 = vpop.f32.mrb[6].mxu0 }
 0x26d   : > { %v1778_v3 = vpop.f32.mrb[7].mxu0 }
 0x26f   : > { %v1024_v4 = vpop.f32.mrb[12].mxu1 }
 0x270   : > { %v1030_v6 = vadd.f32 %v1024_v4, %v961_v62  ;;  %v1785_v7 = vpop.f32.mrb[13].mxu1 }
 0x271   : > { %v1027_v9 = vpop.f32.mrb[14].mxu1 }
 0x272   : > { %v1038_v10 = vadd.f32 %v1684_v5, %v1030_v6  ;;  %v1786_v11 = vpop.f32.mrb[15].mxu1 }
 0x274   : > { %v1039_v13 = vmax.f32 %v1038_v10, 0.0 }
 0x276   : > { %v1047_v15 = vmul.f32 %v1685_v12, %v1039_v13 }
 0x278   : > { %v1055_v16 = vadd.f32 %v1686_v14, %v1047_v15 }
 0x27a   : > { %v1056_v17 = vpack.c.bf16 %v1055_v16, %v1055_v16 }
 0x27c   : > { %1792 = vmatmul.mubr.msk.bf16.vlgmr.msra.gmra.mrb[8].mxu0 %vm650_vm1, %v1056_v17 }
 0x27d   : > { %1805 = vmatprep.mubr.msk.bf16.mxu0 %vm1993_vm0, %v1992_v2 }
 0x34f   : > { %v1117_v20 = vpop.f32.mrb[8].mxu0 }
 0x350   : > { %v1118_v22 = vadd.f32 %v1687_v19, %v1117_v20  ;;  %v1793_v23 = vpop.f32.mrb[9].mxu0 }
 0x351   : > { %v1120_v24 = vpop.f32.mrb[10].mxu0 }
 0x352   : > { %v2275_v25 = vmax.f32 %v1118_v22, 0.0  ;;  %v1794_v26 = vpop.f32.mrb[11].mxu0 }
 0x354   : > { %v1136_v27 = vpack.c.bf16 %v2275_v25, %v2275_v25  ;;  %v1126_v28 = vrot.slane %v2275_v25, 7 }
 0x356   : > { %1800 = vmatmul.mubr.msk.bf16.vlgmr.msra.gmra.mrb[16].mxu1 %vm650_vm1, %v1136_v27  ;;  %1127 = vrot.lane.b32.xlu0 %v1126_v28, %s1995_s24 }
 0x357   : > { %1813 = vmatprep.mubr.msk.f32.mxu1 %vm1993_vm0, %v1992_v2 }
 0x35a   : > { %1132 = vrot.lane.b32.xlu0 %v1126_v28, %s1996_s25 }
 0x35e   : > { %1432 = vrot.lane.b32.xlu0 %v2275_v25, %s1995_s24 }
 0x362   : > { %1414 = vrot.lane.b32.xlu0 %v2275_v25, %s2454_s29  ;;  %s2471_s29 = smov 32  }
 0x3c8   : > { %v1128_v30 = vpop.permute.xlu0 %1127 }
 0x3c9   : > { %v1130_v31 = vsel %vm625_vm3, %v1124_v29, %v1128_v30 }
 0x3ca   : > { %v1197_v32 = vpack.c.bf16 %v1128_v30, %v1130_v31 }
 0x3cc   : > { %v1133_v34 = vpop.permute.xlu0 %1132  ;;  %v1202_v35 = vsel %vm650_vm1, %v1197_v32, 0 }
 0x3cd   : > { %v1135_v36 = vsel %vm625_vm3, %v1131_v33, %v1133_v34  ;;  %1804 = vmatpush3.bf16.xpose.msra.mxu0 %v1202_v35 }
 0x3ce   : > { %v1817_v37 = vpack.c.bf16 %v1133_v34, %v1135_v36  ;;  %1373 = vmatprep.subr.bf16.mxu0 %v1891_v56 }
 0x3d0   : > { %1819 = vmatpush3.bf16.msk.msra.mxu1 %vm1818_vm5, %v1817_v37  ;;  %v1433_v0 = vpop.permute.xlu0 %1432 }
 0x3d4   : > { %v1415_v11 = vpop.permute.xlu0 %1414 }
 0x429   : > { %v1190_v38 = vpop.f32.mrb[16].mxu1 }
 0x42a   : > { %v1196_v39 = vpack.c.bf16 %v1190_v38, %v1190_v38  ;;  %v1801_v40 = vpop.f32.mrb[17].mxu1 }
 0x42b   : > { %v1193_v41 = vpop.f32.mrb[18].mxu1 }
 0x42c   : > { %v1802_v42 = vpop.f32.mrb[19].mxu1  ;;  %1806 = vmatmul.mubr.msk.bf16.vlgmr.msra.gmra.mrb[12].mxu0 %vm650_vm1, %v1196_v39 }
 0x42d   : > { %1405 = vmatprep.mubr.bf16.mxu0 %v1991_v1  ;;  %1374 = vmatpush1.bf16.msra.mxu0 %v1889_v55 }
 0x42e   : > { %1375 = vmatprep.subr.bf16.mxu0 %v1894_v57 }
 0x431   : > { %1376 = vmatpush1.bf16.msra.mxu0 %v1892_v58 }
 0x4ff   : > { %v1238_v45 = vpop.f32.mrb[12].mxu0 }
 0x500   : > { %1245 = vst.msk [vmem:[%s2312_s23] sm:$0xff] %vm1244_vm6, %v1238_v45  ;;  %v1807_v1 = vpop.f32.mrb[13].mxu0  ;;  %v1255_v46 = vsel %vm1254_vm7, %v1238_v45, -3.4028235e+38 }
 0x501   : > { %v1241_v47 = vpop.f32.mrb[14].mxu0  ;;  %v1256_v48 = vsel %vm1244_vm6, %v1255_v46, -inf }
 0x502   : > { %1257 = vmax.xlane.f32.xlu1 %v1256_v48  ;;  %v1808_v49 = vpop.f32.mrb[15].mxu0 }
 0x58f   : > { %v1258_v8 = vpop.xlane.xlu1 %1257 }
 0x590   : > { %vm1262_vm8 = vcmp.ge.f32.partialorder %v1255_v46, %v1258_v8 }
 0x591   : > { %v1263_v53 = vsel %vm1262_vm8, %v1261_v52, 9.0 }
 0x592   : > { %v1264_v54 = vsel %vm1244_vm6, %v1263_v53, inf }
 0x593   : > { %1265 = vmin.xlane.f32.xlu1 %v1264_v54 }
 0x5a4   : > { %1421 = vrot.lane.b32.xlu1 %v2275_v25, %s1996_s25 }
 0x620   : > { %v1266_v59 = vpop.xlane.xlu1 %1265 }
 0x621   : > { %vm1267_vm9 = vcmp.eq.f32.partialorder %v1261_v52, %v1266_v59 }
 0x622   : > { %v1696_v60 = vsel %vm1267_vm9, 1.0, %v1992_v2 }
 0x623   : > { %1814 = vmatmul.mubr.msk.f32.vlgmr.msra.gmra.mrb[20].mxu1 %vm1244_vm6, %v1696_v60 }
 0x624   : > { %v1422_v3 = vpop.permute.xlu1 %1421 }
 0x6f6   : > { %v1341_v61 = vpop.f32.mrb[20].mxu1 }
 0x6f7   : > { %v1345_v62 = vpack.c.bf16 %v1341_v61, %v1341_v61  ;;  %v1815_v63 = vpop.f32.mrb[21].mxu1 }
 0x6f9   : > { %1703 = vmatmul.mubr.msk.bf16.vlgmr.msra.gmra.mrb[16].mxu0 %vm650_vm1, %v1345_v62 }
 0x7cc   : > { %v1407_v4 = vpop.f32.mrb[16].mxu0 }
 0x7cd   : > { %v1409_v5 = vpop.f32.mrb[17].mxu0  ;;  %v1435_v6 = vmul.f32 %v1433_v0, %v1407_v4  ;;  %v1424_v7 = vmul.f32 %v1422_v3, %v1407_v4  ;;  %v1443_v2 = vmul.f32 %v1407_v4, %v2275_v25  ;;  %v1417_v12 = vmul.f32 %v1415_v11, %v1407_v4 }
 0x7ce   : > { %v1411_v9 = vpop.f32.mrb[18].mxu0  ;;  %v1455_v14 = vmul.f32 %v1422_v3, %v1409_v5  ;;  %v1463_v15 = vmul.f32 %v1433_v0, %v1409_v5  ;;  %v1471_v16 = vmul.f32 %v1409_v5, %v2275_v25  ;;  %v1451_v17 = vmul.f32 %v1415_v11, %v1409_v5 }
 0x7cf   : > { %1437 = vrot.lane.b32.xlu0 %v1435_v6, %s1996_s25  ;;  %1426 = vrot.lane.b32.xlu1 %v1424_v7, %s1995_s24  ;;  %v1412_v10 = vpop.f32.mrb[19].mxu0  ;;  %v1418_v13 = vsel %vm650_vm1, %v1417_v12, 0.0 }
 0x7d0   : > { %v1452_v18 = vsel %vm650_vm1, %v1451_v17, 0.0 }
 0x7d3   : > { %1445 = vrot.lane.b32.xlu1 %v1443_v2, %s2471_s29 }
 0x7ee   : > { %1419 = vadd.xlane.f32.xlu0 %v1418_v13 }
 0x804   : > { %1457 = vrot.lane.b32.xlu0 %v1455_v14, %s1995_s24  ;;  %s2456_s24 = sshll.u32 %s2117_s0, 7 }
 0x805   : > { %s2357_s26 = scalar_lea.hbm %s2445_s17, %s2456_s24 }
 0x808   : > { %1465 = vrot.lane.b32.xlu0 %v1463_v15, %s1996_s25 }
 0x80c   : > { %1473 = vrot.lane.b32.xlu0 %v1471_v16, %s2471_s29  ;;  %s1901_s29 = scalar_lea.vmem %s1900_s21, 256 }
 0x80d   : > { %p1903_p1 = scmp.lt.s32.totalorder %s1901_s29, %s1895_s19 }
 0x80f   : > { %p1904_p2 = por %p1903_p1, %p1902_p0 }
 0x811   : > { %p1905_p3 = pnand %p1904_p2, %p1898_p13 }
 0x82b   : > { %1453 = vadd.xlane.f32.xlu0 %v1452_v18 }
 0x841   : > { %v1427_v19 = vpop.permute.xlu1 %1426  ;;  %v1438_v21 = vpop.permute.xlu0 %1437 }
 0x842   : > { %v1429_v20 = vsel %vm650_vm1, %v1427_v19, 0.0  ;;  %v1440_v23 = vsel %vm650_vm1, %v1438_v21, 0.0 }
 0x843   : > { %1430 = vadd.xlane.f32.xlu1 %v1429_v20 }
 0x845   : > { %v1446_v22 = vpop.permute.xlu1 %1445 }
 0x846   : > { %v1448_v24 = vsel %vm650_vm1, %v1446_v22, 0.0 }
 0x847   : > { %1441 = vadd.xlane.f32.xlu1 %v1440_v23  ;;  %1449 = vadd.xlane.f32.xlu0 %v1448_v24 }
 0x87b   : > { %v1420_v25 = vpop.xlane.xlu0 %1419 }
 0x87f   : > { %v1458_v26 = vpop.permute.xlu0 %1457 }
 0x880   : > { %v1460_v27 = vsel %vm650_vm1, %v1458_v26, 0.0 }
 0x881   : > { %1461 = vadd.xlane.f32.xlu1 %v1460_v27 }
 0x883   : > { %v1466_v28 = vpop.permute.xlu0 %1465 }
 0x884   : > { %v1468_v29 = vsel %vm650_vm1, %v1466_v28, 0.0 }
 0x885   : > { %1469 = vadd.xlane.f32.xlu0 %v1468_v29 }
 0x887   : > { %v1474_v30 = vpop.permute.xlu0 %1473 }
 0x888   : > { %v1476_v31 = vsel %vm650_vm1, %v1474_v30, 0.0 }
 0x889   : > { %1477 = vadd.xlane.f32.xlu1 %v1476_v31 }
 0x88a   : > { %1908 = shalt.err (!%p1905_p3)
}
 0x88b   : > { %s1909_s23 = scalar_lea.hbm %s2357_s26, 128  ;;  %s1913_s20 = scalar_lea.hbm %s2445_s17, 256 }
 0x88c   : > { %p1910_p4 = scmp.ne.s32.totalorder %s2357_s26, %s1909_s23  ;;  %p1914_p9 = scmp.lt.u32.totalorder %s2357_s26, %s2445_s17 }
 0x88d   : > { %p1915_p10 = scmp.lt.u32.totalorder %s1913_s20, %s1909_s23  ;;  %p1917_p12 = scmp.lt.u32.totalorder %s1909_s23, %s2357_s26 }
 0x88e   : > { %p1911_p7 = pnand %p1910_p4, %p2134_p5 }
 0x88f   : > { %p1916_p11 = por %p1915_p10, %p1914_p9 }
 0x890   : > { %p1912_p8 = pneg %p1911_p7 }
 0x891   : > { %p1918_p13 = por %p1917_p12, %p1916_p11 }
 0x893   : > { %p1919_p0 = pnand %p1918_p13, %p1912_p8 }
 0x895   : > { %1922 = shalt.err (!%p1919_p0)
}
 0x896   : > { %1820 = dma.vmem_to_hbm [thread:$0]  (%p2134_p5), %s1515_s27, 128, %s2357_s26, %s1496_s30   ;;  %vm1479_vm10 = vcmask 7168   ;;  %vm1481_vm11 = vcmask 15360   ;;  %vm1483_vm12 = vcmask 23552   ;;  %vm1485_vm13 = vcmask 31744  }
 0x897   : > { %vm1487_vm14 = vcmask 39936   ;;  %vm1489_vm15 = vcmask 48128   ;;  %s2472_s24 = sshll.u32 %s2306_s1, 3  ;;  %vm1491_vm0 = vcmask 56320   ;;  %vm1493_vm1 = vcmask 64512   ;;  %s2473_s30 = sshll.u32 %s2117_s0, 7 }
 0x898   : > { %s601_s26 = scalar_lea.vmem [#allocation4], %s2472_s24  ;;  %s2385_s23 = scalar_lea.hbm %s2446_s18, %s2473_s30 }
 0x899   : > { %s1527_s27 = sshll.u32 %s601_s26, 4  ;;  %s1501_s25 = scalar_lea.sflag [#allocation5], %s2306_s1  ;;  %s2387_s27 = int_to_ptr.vmem [resolvable:$true] %s1527_s27 }
 0x89a   : > { %s1923_s22 = scalar_lea.vmem %s2387_s27, 128  ;;  %s2000_s20 = smov [#allocation4]  }
 0x89b   : > { %p1924_p1 = scmp.ne.s32.totalorder %s2387_s27, %s1923_s22  ;;  %s1927_s0 = sshll.u32 %s2000_s20, 4  ;;  %s1928_s0 = int_to_ptr.vmem [resolvable:$false] %s1927_s0 }
 0x89c   : > { %s1929_s21 = scalar_lea.vmem %s1928_s0, 256  ;;  %p1930_p4 = scmp.lt.s32.totalorder %s2387_s27, %s1928_s0 }
 0x89d   : > { %p1925_p2 = pnand %p1924_p1, %p2134_p5  ;;  %p1931_p7 = scmp.lt.s32.totalorder %s1929_s21, %s1923_s22 }
 0x89f   : > { %p1926_p3 = pneg %p1925_p2  ;;  %p1932_p8 = por %p1931_p7, %p1930_p4 }
 0x8a1   : > { %p1933_p9 = pnand %p1932_p8, %p1926_p3 }
 0x8b8   : > { %v1454_v33 = vpop.xlane.xlu0 %1453 }
 0x8d0   : > { %v1431_v32 = vpop.xlane.xlu1 %1430 }
 0x8d1   : > { %v1480_v35 = vsel %vm1479_vm10, %v1420_v25, %v1431_v32 }
 0x8d4   : > { %v1442_v34 = vpop.xlane.xlu1 %1441  ;;  %v1450_v37 = vpop.xlane.xlu0 %1449 }
 0x8d5   : > { %v1482_v36 = vsel %vm1481_vm11, %v1480_v35, %v1442_v34 }
 0x8d6   : > { %v1484_v38 = vsel %vm1483_vm12, %v1482_v36, %v1450_v37 }
 0x8d7   : > { %v1486_v41 = vsel %vm1485_vm13, %v1484_v38, %v1454_v33 }
 0x90e   : > { %v1462_v39 = vpop.xlane.xlu1 %1461 }
 0x90f   : > { %v1488_v42 = vsel %vm1487_vm14, %v1486_v41, %v1462_v39 }
 0x912   : > { %v1470_v40 = vpop.xlane.xlu0 %1469 }
 0x913   : > { %v1490_v43 = vsel %vm1489_vm15, %v1488_v42, %v1470_v40 }
 0x916   : > { %v1478_v44 = vpop.xlane.xlu1 %1477 }
 0x917   : > { %v1492_v45 = vsel %vm1491_vm0, %v1490_v43, %v1478_v44 }
 0x918   : > { %1494 = vst.msk [vmem:[%s601_s26] sm:$0xff] %vm1493_vm1, %v1492_v45 }
 0x919   : > { %1936 = shalt.err (!%p1933_p9)
}
 0x91a   : > { %s1937_s1 = scalar_lea.hbm %s2385_s23, 128  ;;  %s1941_s30 = scalar_lea.hbm %s2446_s18, 256 }
 0x91b   : > { %p1938_p10 = scmp.ne.s32.totalorder %s2385_s23, %s1937_s1  ;;  %p1942_p13 = scmp.lt.u32.totalorder %s2385_s23, %s2446_s18 }
 0x91c   : > { %p1943_p0 = scmp.lt.u32.totalorder %s1941_s30, %s1937_s1  ;;  %p1945_p2 = scmp.lt.u32.totalorder %s1937_s1, %s2385_s23 }
 0x91d   : > { %p1939_p11 = pnand %p1938_p10, %p2134_p5 }
 0x91e   : > { %p1944_p1 = por %p1943_p0, %p1942_p13 }
 0x91f   : > { %p1940_p12 = pneg %p1939_p11 }
 0x920   : > { %p1946_p3 = por %p1945_p2, %p1944_p1 }
 0x922   : > { %p1947_p4 = pnand %p1946_p3, %p1940_p12 }
 0x924   : > { %1950 = shalt.err (!%p1947_p4)
}
 0x925   : > { %1821 = dma.vmem_to_hbm [thread:$0]  (%p2134_p5), %s2387_s27, 128, %s2385_s23, %s1501_s25  }
 0x926 PF: > { %s2474_s22 = sld [smem:[#allocation10_spill]]  ;;  %s2475_s20 = sld [smem:[#allocation8_spill]] }
 0x92c   : > { %p1831_p7 = scmp.ge.s32.totalorder %s2474_s22, 2  ;;  %s1539_s21 = sand.u32 1, %s2475_s20  }
 0x92d   : > { %s1540_s24 = scalar_lea.sflag [#allocation3], %s1539_s21 }
 0x92e   : > { %p1825_p8 = pnand %p1831_p7, %p2138_p6 }
 0x930   : > { %1968 = dma.done.wait (!%p1825_p8), %s1540_s24, 128  }
 0x931   : > { %1970 = vsyncadd (!%p1825_p8), %s1540_s24, 4294967168  ;;  %s1549_s1 = scalar_lea.sflag [#allocation5], %s1539_s21 }
 0x932   : > { %1972 = dma.done.wait (!%p1825_p8), %s1549_s1, 128  }
 0x933   : > { %1974 = vsyncadd (!%p1825_p8), %s1549_s1, 4294967168  ;;  %s2477_s30 = sld [smem:[#allocation11_spill]]  ;;  %s2478_s2 = sld [smem:[#allocation9_spill]] }
 0x934   : > { %s2479_s29 = sld [smem:[#allocation12_spill]]  ;;  %s2480_s27 = smov %s1981_s28 }
 0x939   : > { %p32_p5 = scmp.ge.s32.totalorder %s2477_s30, 4   ;;  %s2481_s28 = smov %s2478_s2 }
 0x93b   :  { %34 = sbr.rel (!%p32_p5) target bundleno = 9 (0x9), region = 150 }
 0x942   :  { %1554 = vsyncpa [#allocation3], 1 }
 0x943   :  { %1556 = vsyncpa [#allocation3 + $0x1], 1 }
 0x944   :  { %1557 = vsyncpa [#allocation5], 1 }
 0x945   :  { %1559 = vsyncpa [#allocation5 + $0x1], 1 }

</bundles_post_ra>
